<compile_context>
chip_gen: v7x
topology: tpu7x:2x2x1
jax: 0.10.0
libtpu: 0.0.40
codegen_flags: <defaults>
</compile_context>

<pallas_src>
import jax
import jax.numpy as jnp
from jax import lax
from jax.experimental import pallas as pl
from jax.experimental.pallas import tpu as pltpu


def _round_up(n, m):
    return ((n + m - 1) // m) * m


def classifier_kernel(x_ref, w1_ref, b1_ref, w2_ref, b2_ref, o_ref):
    # Layer 1 on the MXU: (TB, C) bf16 x (C, F) bf16 -> (TB, F) f32.
    h = jnp.dot(x_ref[...], w1_ref[...], preferred_element_type=jnp.float32)
    h = jnp.maximum(h + b1_ref[...], 0.0)
    # Dropout: identity in eval mode.

    # Layer 2: (1, F) x (TB, F)^T -> (1, TB).  Contracting both last dims
    # keeps the batch on lanes -> lane-dense output row, no relayout needed.
    z = lax.dot_general(
        w2_ref[...], h,
        dimension_numbers=(((1,), (1,)), ((), ())),
        preferred_element_type=jnp.float32,
    ) + b2_ref[0, 0]

    # Sigmoid: exp and approximate reciprocal both run in the EUP slot.
    o_ref[...] = pl.reciprocal(1.0 + jnp.exp(-z), approx=True).astype(o_ref.dtype)


def classifier_forward(x, w1, b1, w2, b2, *, block_b=512):
    """x: (B, C) float32 -> (B,) float32 (squeezed, like PyTorch)."""
    B, C = x.shape
    F = w1.shape[1]

    # Batch tile: >= 512 rows for real workloads (multiple of 8 and 128 so the
    # lane-dense (1, TB) output block is legal when there are multiple tiles);
    # for tiny B fall back to a single full-extent tile.
    tb = block_b if B > block_b else _round_up(B, 8)
    b_pad = _round_up(B, tb)
    if b_pad != B:
        x = jnp.pad(x, ((0, b_pad - B), (0, 0)))
    num_tiles = b_pad // tb

    # bf16 matmul operands; f32 accumulate + f32 elementwise inside the kernel.
    x_bf = x.astype(jnp.bfloat16)
    w1_bf = w1.astype(jnp.bfloat16)

    out = pl.pallas_call(
        classifier_kernel,
        out_shape=jax.ShapeDtypeStruct((1, b_pad), jnp.float32),
        grid_spec=pltpu.PrefetchScalarGridSpec(
            num_scalar_prefetch=0,
            grid=(num_tiles,),
            in_specs=[
                pl.BlockSpec((tb, C), lambda i: (i, 0)),   # x: tiled over batch
                pl.BlockSpec((C, F), lambda i: (0, 0)),    # w1: VMEM resident
                pl.BlockSpec((1, F), lambda i: (0, 0)),    # b1: VMEM resident
                pl.BlockSpec((1, F), lambda i: (0, 0)),    # w2 row: VMEM resident
                pl.BlockSpec(memory_space=pltpu.MemorySpace.SMEM),  # b2 scalar
            ],
            out_specs=pl.BlockSpec((1, tb), lambda i: (0, i)),
        ),
        compiler_params=pltpu.CompilerParams(
            dimension_semantics=("parallel",),
        ),
    )(x_bf, w1_bf, b1, w2, b2)

    # Drop padding, squeeze() like the PyTorch module.
    return jnp.squeeze(out[0, :B])


def init_params(key, n_components, n_filters):
    """Deterministic init mimicking nn.Linear's uniform(-1/sqrt(fan_in), ...)."""
    k1, k2, k3, k4 = jax.random.split(key, 4)
    bound1 = 1.0 / jnp.sqrt(n_components)
    bound2 = 1.0 / jnp.sqrt(n_filters)
    w1 = jax.random.uniform(k1, (n_components, n_filters), jnp.float32,
                            -bound1, bound1)
    b1 = jax.random.uniform(k2, (1, n_filters), jnp.float32, -bound1, bound1)
    w2 = jax.random.uniform(k3, (1, n_filters), jnp.float32, -bound2, bound2)
    b2 = jax.random.uniform(k4, (1, 1), jnp.float32, -bound2, bound2)
    return w1, b1, w2, b2


if __name__ == "__main__":
    B = 8             # batch
    n_components = 32
    n_filters = 64

    key = jax.random.PRNGKey(0)
    kx, kp = jax.random.split(key)
    x = jax.random.normal(kx, (B, n_components), jnp.float32)
    w1, b1, w2, b2 = init_params(kp, n_components, n_filters)

    out = classifier_forward(x, w1, b1, w2, b2)
    out = jax.block_until_ready(out)

    # Reference in plain JAX, mirroring the kernel's bf16 matmul inputs with
    # f32 accumulation (eval-mode dropout = identity, exact sigmoid).
    xb = x.astype(jnp.bfloat16)
    w1b = w1.astype(jnp.bfloat16)
    h_ref = jnp.maximum(
        jnp.dot(xb, w1b, preferred_element_type=jnp.float32) + b1, 0.0)
    z_ref = jnp.sum(h_ref * w2, axis=-1) + b2[0, 0]
    ref = 1.0 / (1.0 + jnp.exp(-z_ref))

    assert out.shape == (B,)
    # 2e-3 covers the approximate-reciprocal sigmoid (<~2.5e-4 abs error).
    assert jnp.allclose(out, ref, atol=2e-3, rtol=0), (out, ref)

    print("KERNEL_OK")
</pallas_src>

<mosaic_0001>
module attributes {stable_mosaic.version = 11 : i64} {
  func.func @classifier_kernel(%arg0: i32, %arg1: memref<8x32xbf16, #tpu.memory_space<vmem>>, %arg2: memref<32x64xbf16, #tpu.memory_space<vmem>>, %arg3: memref<1x64xf32, #tpu.memory_space<vmem>>, %arg4: memref<1x64xf32, #tpu.memory_space<vmem>>, %arg5: memref<1x1xf32, #tpu.memory_space<smem>>, %arg6: memref<1x8xf32, #tpu.memory_space<vmem>>) attributes {dimension_semantics = [#tpu.dimension_semantics<parallel>], iteration_bounds = array<i64: 1>, scalar_prefetch = 0 : i64, scratch_operands = 0 : i64, tpu.core_type = #tpu.core_type<tc>, window_params = [{transform_indices = @transform_0, window_bounds = array<i64: 8, 32>}, {pipeline_mode = #tpu.pipeline_mode<synchronous>, transform_indices = @transform_1, window_bounds = array<i64: 32, 64>}, {pipeline_mode = #tpu.pipeline_mode<synchronous>, transform_indices = @transform_2, window_bounds = array<i64: 1, 64>}, {pipeline_mode = #tpu.pipeline_mode<synchronous>, transform_indices = @transform_3, window_bounds = array<i64: 1, 64>}, {transform_indices = @transform_4, window_bounds = array<i64: 1, 1>}, {transform_indices = @transform_5, window_bounds = array<i64: 1, 8>}]} {
    %c0 = arith.constant 0 : index
    %c0_0 = arith.constant 0 : index
    %0 = vector.load %arg1[%c0, %c0_0] : memref<8x32xbf16, #tpu.memory_space<vmem>>, vector<8x32xbf16>
    %c0_1 = arith.constant 0 : index
    %c0_2 = arith.constant 0 : index
    %1 = vector.load %arg2[%c0_1, %c0_2] : memref<32x64xbf16, #tpu.memory_space<vmem>>, vector<32x64xbf16>
    %cst = arith.constant dense<0.000000e+00> : vector<8x64xf32>
    %2 = tpu.matmul %0, %1, %cst {dimension_numbers = #tpu.dot_dimension_numbers<[1], [0], [0], [1], [0, 0, 1, 1], [], []>} : vector<8x32xbf16>, vector<32x64xbf16>, vector<8x64xf32> -> vector<8x64xf32>
    %c0_3 = arith.constant 0 : index
    %c0_4 = arith.constant 0 : index
    %3 = vector.load %arg3[%c0_3, %c0_4] : memref<1x64xf32, #tpu.memory_space<vmem>>, vector<1x64xf32>
    %4 = vector.broadcast %3 : vector<1x64xf32> to vector<8x64xf32>
    %5 = arith.addf %2, %4 : vector<8x64xf32>
    %cst_5 = arith.constant 0.000000e+00 : f32
    %6 = vector.broadcast %cst_5 : f32 to vector<8x64xf32>
    %7 = arith.maximumf %5, %6 : vector<8x64xf32>
    %c0_6 = arith.constant 0 : index
    %c0_7 = arith.constant 0 : index
    %8 = vector.load %arg4[%c0_6, %c0_7] : memref<1x64xf32, #tpu.memory_space<vmem>>, vector<1x64xf32>
    %cst_8 = arith.constant dense<0.000000e+00> : vector<1x8xf32>
    %9 = tpu.matmul %8, %7, %cst_8 {dimension_numbers = #tpu.dot_dimension_numbers<[1], [1], [0], [0], [0, 0, 1, 0], [], []>} : vector<1x64xf32>, vector<8x64xf32>, vector<1x8xf32> -> vector<1x8xf32>
    %c0_9 = arith.constant 0 : index
    %c0_10 = arith.constant 0 : index
    %10 = memref.load %arg5[%c0_9, %c0_10] : memref<1x1xf32, #tpu.memory_space<smem>>
    %11 = vector.broadcast %10 : f32 to vector<1x8xf32>
    %12 = arith.addf %9, %11 : vector<1x8xf32>
    %cst_11 = arith.constant 0.000000e+00 : f32
    %13 = vector.broadcast %cst_11 : f32 to vector<1x8xf32>
    %14 = arith.subf %13, %12 : vector<1x8xf32>
    %15 = math.exp %14 : vector<1x8xf32>
    %cst_12 = arith.constant 1.000000e+00 : f32
    %16 = vector.broadcast %cst_12 : f32 to vector<1x8xf32>
    %17 = arith.addf %16, %15 : vector<1x8xf32>
    %18 = tpu.reciprocal %17 {approx = true} : vector<1x8xf32> -> vector<1x8xf32>
    %c0_13 = arith.constant 0 : index
    %c0_14 = arith.constant 0 : index
    %19 = vector.load %arg6[%c0_13, %c0_14] : memref<1x8xf32, #tpu.memory_space<vmem>>, vector<1x8xf32>
    tpu.vector_store %arg6[%c0_13, %c0_14], %18 {strides = array<i32>} : memref<1x8xf32, #tpu.memory_space<vmem>>, vector<1x8xf32>,
    return
  }
  func.func @transform_0(%arg0: i32) -> (i32, i32) {
    %c0_i32 = arith.constant 0 : i32
    %c0_i32_0 = arith.constant 0 : i32
    return %arg0, %c0_i32 : i32, i32
  }
  func.func @transform_1(%arg0: i32) -> (i32, i32) {
    %c0_i32 = arith.constant 0 : i32
    %c0_i32_0 = arith.constant 0 : i32
    %c0_i32_1 = arith.constant 0 : i32
    return %c0_i32, %c0_i32_0 : i32, i32
  }
  func.func @transform_2(%arg0: i32) -> (i32, i32) {
    %c0_i32 = arith.constant 0 : i32
    %c0_i32_0 = arith.constant 0 : i32
    %c0_i32_1 = arith.constant 0 : i32
    return %c0_i32, %c0_i32_0 : i32, i32
  }
  func.func @transform_3(%arg0: i32) -> (i32, i32) {
    %c0_i32 = arith.constant 0 : i32
    %c0_i32_0 = arith.constant 0 : i32
    %c0_i32_1 = arith.constant 0 : i32
    return %c0_i32, %c0_i32_0 : i32, i32
  }
  func.func @transform_4(%arg0: i32) -> (i32, i32) {
    %c0_i32 = arith.constant 0 : i32
    %c0_i32_0 = arith.constant 0 : i32
    %c0_i32_1 = arith.constant 0 : i32
    return %c0_i32, %c0_i32_0 : i32, i32
  }
  func.func @transform_5(%arg0: i32) -> (i32, i32) {
    %c0_i32 = arith.constant 0 : i32
    %c0_i32_0 = arith.constant 0 : i32
    return %c0_i32, %arg0 : i32, i32
  }
}

</mosaic_0001>

<bundles_post_ra>
// kernel: tpu_custom_call.1
= control target key start
LH: loop header
LB: loop body
LE: loop exit
PB: predicated region body
PF: predicated region fallthrough
CT: control target
= control target key end

     0   :  { %11 = vsyncpa [#allocation4], 0  ;;  %s419_s0 = inlined_call_operand.hbm [shape: bf16[8,32], index: 0, kind: input, shape index: {}]   ;;  %s420_s1 = inlined_call_operand.hbm [shape: bf16[32,64], index: 1, kind: input, shape index: {}]   ;;  %s421_s2 = inlined_call_operand.vmem [shape: f32[1,64], index: 2, kind: input, shape index: {}]   ;;  %s422_s3 = inlined_call_operand.vmem [shape: f32[1,64], index: 3, kind: input, shape index: {}]   ;;  %s423_s4 = inlined_call_operand.<no memory space> [shape: f32[1,1], index: 4, kind: input, shape index: {}]   ;;  %s424_s5 = inlined_call_operand.hbm [shape: f32[1,8], index: 5, kind: output, shape index: {}]  }
   0x1   :  { %12 = vsyncpa [#allocation7], 0 }
   0x2   :  { %13 = vsyncpa [#allocation5], 0  ;;  %s330_s18 = smov [#allocation3]   ;;  %s331_s20 = smov [#allocation6]  }
   0x3   :  { %s20_s19 = sshll.u32 %s330_s18, 4  ;;  %s29_s21 = sshll.u32 %s331_s20, 4  ;;  %s21_s19 = int_to_ptr.vmem [resolvable:$true] %s20_s19  ;;  %s367_s21 = int_to_ptr.vmem [resolvable:$true] %s29_s21 }
   0x4   :  { %s258_s24 = scalar_lea.hbm %s419_s0, 64 }
   0x5   :  { %p259_p0 = scmp.ne.s32.totalorder %s419_s0, %s258_s24  ;;  %p262_p1 = scmp.lt.u32.totalorder %s258_s24, %s419_s0 }
   0x7   :  { %p264_p2 = pnand %p262_p1, %p259_p0 }
   0x9   :  { %267 = shalt.err (!%p264_p2)
}
   0xa   :  { %s268_s29 = scalar_lea.vmem %s21_s19, 64  ;;  %p273_p4 = scmp.lt.s32.totalorder %s21_s19, %s21_s19 }
   0xb   :  { %p269_p3 = scmp.ne.s32.totalorder %s21_s19, %s268_s29  ;;  %p274_p5 = scmp.lt.s32.totalorder %s268_s29, %s268_s29 }
   0xd   :  { %p275_p6 = por %p274_p5, %p273_p4 }
   0xf   :  { %p276_p7 = pnand %p275_p6, %p269_p3 }
  0x11   :  { %279 = shalt.err (!%p276_p7)
}
  0x12   :  { %23 = dma.hbm_to_vmem [thread:$0]  %s419_s0, 64, %s21_s19, [#allocation4]  }
  0x13   :  { %s280_s9 = scalar_lea.hbm %s420_s1, 256 }
  0x14   :  { %p281_p8 = scmp.ne.s32.totalorder %s420_s1, %s280_s9  ;;  %p284_p9 = scmp.lt.u32.totalorder %s280_s9, %s420_s1 }
  0x16   :  { %p286_p10 = pnand %p284_p9, %p281_p8 }
  0x18   :  { %289 = shalt.err (!%p286_p10)
}
  0x19   :  { %s290_s14 = scalar_lea.vmem %s367_s21, 256  ;;  %p295_p12 = scmp.lt.s32.totalorder %s367_s21, %s367_s21 }
  0x1a   :  { %p291_p11 = scmp.ne.s32.totalorder %s367_s21, %s290_s14  ;;  %p296_p13 = scmp.lt.s32.totalorder %s290_s14, %s290_s14 }
  0x1c   :  { %p297_p0 = por %p296_p13, %p295_p12 }
  0x1e   :  { %p298_p1 = pnand %p297_p0, %p291_p11 }
  0x20   :  { %301 = shalt.err (!%p298_p1)
}
  0x21   :  { %s332_s0 = smov 64   ;;  %s333_s15 = smov 4  }
  0x22   :  { %35 = dma.hbm_to_vmem [thread:$0]  %s420_s1, 256, %s367_s21, [#allocation7], %s332_s0, %s332_s0, %s333_s15  }
  0x23   :  { %324 = dma.done.wait [#allocation4], 64  }
  0x24   :  { %325 = vsyncadd [#allocation4], 4294967232 }
  0x25   :  { %326 = dma.done.wait [#allocation7], 256  }
  0x26   :  { %327 = vsyncadd [#allocation7], 4294967040  ;;  %v334_v0 = vmov 0.0   ;;  %vm335_vm0 = vmmov 0   ;;  %v252_v1 = vld [vmem:[#allocation6] sm:$0xff]   ;;  %v253_v2 = vld [vmem:[#allocation6 + $0x8] sm:$0xff]   ;;  %v120_v12 = vstv %s423_s4 }
  0x27   :  { %232 = vmatprep.subr.bf16.mxu0 %v334_v0  ;;  %236 = vmatprep.mubr.msk.bf16.mxu0 %vm335_vm0, %v334_v0  ;;  %v49_v3 = vld [vmem:[#allocation3] sm:$0xf]  ;;  %vm73_vm1 = vcmask 261120   ;;  %vm121_vm2 = vcmask 523264   ;;  %vm203_vm3 = vcmask 57344  }
  0x28   :  { %240 = vmatprep.subr.mxu1 %v334_v0  ;;  %242 = vmatprep.mubr.msk.f32.mxu1 %vm335_vm0, %v334_v0  ;;  %v221_v4 = vld [vmem:[%s421_s2] ss:$0 sm:$0xff]  ;;  %s336_s2 = smov [#allocation8]  }
  0x29   :  { %233 = vmatpush3.bf16.msra.mxu0 %v252_v1  ;;  %v118_v11 = vld [vmem:[%s422_s3] sm:$0x1]  ;;  %s211_s23 = sshll.u32 %s336_s2, 4  ;;  %s212_s23 = int_to_ptr.vmem [resolvable:$true] %s211_s23 }
  0x2a   :  { %234 = vmatprep.subr.bf16.mxu0 %v334_v0  ;;  %s302_s3 = scalar_lea.vmem %s212_s23, 16  ;;  %s306_s24 = scalar_lea.vmem %s212_s23, 32 }
  0x2b   :  { %p303_p2 = scmp.ne.s32.totalorder %s212_s23, %s302_s3  ;;  %p307_p3 = scmp.lt.s32.totalorder %s212_s23, %s212_s23 }
  0x2c   :  { %p308_p4 = scmp.lt.s32.totalorder %s306_s24, %s302_s3 }
  0x2d   :  { %235 = vmatpush3.bf16.msra.mxu0 %v253_v2 }
  0x2e   :  { %p309_p5 = por %p308_p4, %p307_p3 }
  0x30   :  { %237 = vmatmul.mubr.msk.bf16.vlgmr.msra.gmra.mrb[0].mxu0 %vm73_vm1, %v49_v3  ;;  %p310_p6 = pnand %p309_p5, %p303_p2 }
 0x103   :  { %v111_v5 = vpop.f32.mrb[0].mxu0 }
 0x104   :  { %v112_v6 = vadd.f32 %v221_v4, %v111_v5  ;;  %v238_v7 = vpop.f32.mrb[1].mxu0 }
 0x105   :  { %v114_v8 = vpop.f32.mrb[2].mxu0 }
 0x106   :  { %v117_v9 = vmax.f32 %v112_v6, 0.0  ;;  %v239_v10 = vpop.f32.mrb[3].mxu0 }
 0x108   :  { %241 = vmatpush3.xpose.msk.msra.mxu1 %vm121_vm2, %v117_v9 }
 0x10b   :  { %243 = vmatmul.mubr.msk.f32.vlgmr.msra.gmra.mrb[0].mxu1 %vm121_vm2, %v118_v11 }
 0x1de   :  { %v194_v13 = vpop.f32.mrb[0].mxu1 }
 0x1df   :  { %v195_v14 = vadd.f32 %v194_v13, %v120_v12  ;;  %v244_v15 = vpop.f32.mrb[1].mxu1 }
 0x1e1   :  { %v198_v16 = vsub.f32 0.0, %v195_v14 }
 0x1e3   :  { %v199_v17 = vmul.f32 1.442695, %v198_v16 }
 0x1e5   :  { %254 = vpow2.f32 %v199_v17 }
 0x1ef   :  { %v255_v18 = vpop.eup %254 }
 0x1f0   :  { %v201_v19 = vadd.f32 1.0, %v255_v18 }
 0x1f2   :  { %256 = vrcp.f32 %v201_v19 }
 0x1fc   :  { %v257_v20 = vpop.eup %256 }
 0x1fd   :  { %204 = vst.msk [vmem:[#allocation8] sm:$0x1] %vm203_vm3, %v257_v20 }
 0x1fe   :  { %313 = shalt.err (!%p310_p6)
}
 0x1ff   :  { %s314_s26 = scalar_lea.hbm %s424_s5, 16 }
 0x200   :  { %p315_p7 = scmp.ne.s32.totalorder %s424_s5, %s314_s26  ;;  %p318_p8 = scmp.lt.u32.totalorder %s314_s26, %s424_s5 }
 0x202   :  { %p320_p9 = pnand %p318_p8, %p315_p7 }
 0x204   :  { %323 = shalt.err (!%p320_p9)
}
 0x205   :  { %214 = dma.vmem_to_hbm [thread:$0]  %s212_s23, 16, %s424_s5, [#allocation5]  }
 0x206   :  { %328 = dma.done.wait [#allocation5], 16  }
 0x207   :  { %329 = vsyncadd [#allocation5], 4294967280 }
 0x208   :  { %218 = vsyncpa [#allocation4], 1 }
 0x209   :  { %219 = vsyncpa [#allocation7], 1 }
 0x20a   :  { %220 = vsyncpa [#allocation5], 1 }

</bundles_post_ra>
